<compile_context>
chip_gen: v5e
topology: v5e:2x2
jax: 0.10.0
libtpu: 0.0.40
codegen_flags: <defaults>
</compile_context>

<pallas_src>
import jax
import jax.numpy as jnp
import numpy as np
from jax import lax
from jax.experimental import pallas as pl
from jax.experimental.pallas import tpu as pltpu


def _score_kernel(x_ref, w1_ref, b1_ref, w2_ref, b2_ref, w3t_ref, b3_ref, o_ref):
    # Layer 1: (tm, E) @ (E, H) -> f32 accumulation on the MXU; bias + ReLU in f32 (VPU).
    x = x_ref[...]
    h1 = jnp.dot(x, w1_ref[...], preferred_element_type=jnp.float32)
    h1 = jnp.maximum(h1 + b1_ref[...], 0.0)
    # Dropout(0.2): identity at inference.
    h1 = h1.astype(w2_ref.dtype)

    # Layer 2: (tm, H) @ (H, H)
    h2 = jnp.dot(h1, w2_ref[...], preferred_element_type=jnp.float32)
    h2 = jnp.maximum(h2 + b2_ref[...], 0.0)
    # Dropout(0.2): identity at inference.
    h2 = h2.astype(w3t_ref.dtype)

    # Layer 3: contract W3^T (1, H) with h2 (tm, H) over H -> (1, tm).
    # This keeps the output row lane-dense (unmasked stores) instead of a (tm, 1) column,
    # and avoids streaming tm LHS rows through the MXU for a width-1 output.
    scores = lax.dot_general(
        w3t_ref[...], h2,
        dimension_numbers=(((1,), (1,)), ((), ())),
        preferred_element_type=jnp.float32,
    )
    scores = scores + b3_ref[0]          # scalar bias from SMEM
    o_ref[0] = scores.astype(o_ref.dtype)


def score_forward(x, params, *, tm=512, compute_dtype=jnp.float32):
    """x: [N, E] float32. Returns [N, 1] float32 scores.

    tm: batch-row tile (sweep 512-2048, keep a multiple of 256; keep N//tm >= 2 on v7x
        so both TensorCores get grid steps). compute_dtype=jnp.bfloat16 enables the
    bf16 MXU fast path on v6e/v7x (f32 accumulation, f32 bias/ReLU)."""
    w1, b1, w2, b2, w3, b3 = params
    N, E = x.shape
    H = w1.shape[1]

    cd = jnp.dtype(compute_dtype)
    xk = x.astype(cd)
    w1k = w1.astype(cd)
    w2k = w2.astype(cd)
    w3tk = w3.reshape(H, 1).T.astype(cd)          # (1, H)
    # Biases stay f32: they are added to the f32 MXU accumulators on the VPU.
    b1k = b1.astype(jnp.float32)                   # (1, H)
    b2k = b2.astype(jnp.float32)                   # (1, H)
    b3v = b3.reshape((1,)).astype(jnp.float32)     # scalar, lives in SMEM

    # Tile selection: clamp for tiny batches (don't pad a handful of rows up to 512),
    # otherwise use the big tile and zero-pad the tail.
    tm_eff = int(min(tm, max(8, -(-N // 8) * 8)))
    n_tiles = -(-N // tm_eff)
    n_pad = n_tiles * tm_eff
    if n_pad != N:
        xk = jnp.pad(xk, ((0, n_pad - N), (0, 0)))

    full = lambda i: (0, 0)  # weights / biases resident across all batch tiles
    # TODO(synk): optionally zero-pad E up to 128 for fully lane-dense x loads if the
    #             x-stream ever shows up in the profile (minor vs the tm change).

    out = pl.pallas_call(
        _score_kernel,
        out_shape=jax.ShapeDtypeStruct((n_tiles, 1, tm_eff), jnp.float32),
        grid_spec=pltpu.PrefetchScalarGridSpec(
            num_scalar_prefetch=0,
            grid=(n_tiles,),
            in_specs=[
                pl.BlockSpec((tm_eff, E), lambda i: (i, 0)),        # x rows tile
                pl.BlockSpec((E, H), full),                         # W1
                pl.BlockSpec((1, H), full),                         # b1
                pl.BlockSpec((H, H), full),                         # W2
                pl.BlockSpec((1, H), full),                         # b2
                pl.BlockSpec((1, H), full),                         # W3^T
                pl.BlockSpec(memory_space=pltpu.MemorySpace.SMEM),  # b3 scalar
            ],
            out_specs=pl.BlockSpec((1, 1, tm_eff), lambda i: (i, 0, 0)),
        ),
        compiler_params=pltpu.CompilerParams(
            dimension_semantics=("parallel",),   # megacore sharding on v7x
        ),
    )(xk, w1k, b1k, w2k, b2k, w3tk, b3v)

    # (n_tiles, 1, tm) slab -> (N, 1) scores (drop batch padding).
    return out.reshape(n_pad, 1)[:N]


def init_params(key, embeds_dim, hidden_dim):
    """Deterministic init mimicking torch.nn.Linear (uniform +/- 1/sqrt(fan_in))."""
    ks = jax.random.split(key, 6)

    def linear(kw, kb, fan_in, fan_out):
        bound = 1.0 / np.sqrt(fan_in)
        w = jax.random.uniform(kw, (fan_in, fan_out), jnp.float32, -bound, bound)
        b = jax.random.uniform(kb, (1, fan_out), jnp.float32, -bound, bound)
        return w, b

    w1, b1 = linear(ks[0], ks[1], embeds_dim, hidden_dim)
    w2, b2 = linear(ks[2], ks[3], hidden_dim, hidden_dim)
    w3, b3 = linear(ks[4], ks[5], hidden_dim, 1)
    return (w1, b1, w2, b2, w3, b3)


def score_reference(x, params):
    w1, b1, w2, b2, w3, b3 = params
    h1 = jnp.maximum(x @ w1 + b1, 0.0)
    h2 = jnp.maximum(h1 @ w2 + b2, 0.0)
    return h2 @ w3 + b3


if __name__ == "__main__":
    embeds_dim, hidden_dim = 32, 128

    key = jax.random.PRNGKey(0)
    k_x, k_p, k_x2 = jax.random.split(key, 3)
    params = init_params(k_p, embeds_dim, hidden_dim)

    # 1) Small ragged batch, f32: exercises the pad + clamp path, tight tolerance.
    x_small = jax.random.normal(k_x, (10, embeds_dim), dtype=jnp.float32)
    out = jax.block_until_ready(score_forward(x_small, params))
    assert out.shape == (10, 1)
    np.testing.assert_allclose(
        np.asarray(out), np.asarray(score_reference(x_small, params)),
        rtol=1e-5, atol=1e-5)

    # 2) Multi-tile batch on the bf16 fast path (v6e/v7x), f32 accumulation.
    x_big = jax.random.normal(k_x2, (1024, embeds_dim), dtype=jnp.float32)
    out_bf16 = jax.block_until_ready(
        score_forward(x_big, params, tm=512, compute_dtype=jnp.bfloat16))
    assert out_bf16.shape == (1024, 1)
    np.testing.assert_allclose(
        np.asarray(out_bf16), np.asarray(score_reference(x_big, params)),
        rtol=0.1, atol=0.05)

    print("KERNEL_OK")
</pallas_src>

<mosaic_0001>
module attributes {stable_mosaic.version = 11 : i64} {
  func.func @_score_kernel(%arg0: i32, %arg1: memref<16x32xf32, #tpu.memory_space<vmem>>, %arg2: memref<32x128xf32, #tpu.memory_space<vmem>>, %arg3: memref<1x128xf32, #tpu.memory_space<vmem>>, %arg4: memref<128x128xf32, #tpu.memory_space<vmem>>, %arg5: memref<1x128xf32, #tpu.memory_space<vmem>>, %arg6: memref<1x128xf32, #tpu.memory_space<vmem>>, %arg7: memref<1xf32, #tpu.memory_space<smem>>, %arg8: memref<1x1x16xf32, #tpu.memory_space<vmem>>) attributes {dimension_semantics = [#tpu.dimension_semantics<parallel>], iteration_bounds = array<i64: 1>, scalar_prefetch = 0 : i64, scratch_operands = 0 : i64, tpu.core_type = #tpu.core_type<tc>, window_params = [{transform_indices = @transform_0, window_bounds = array<i64: 16, 32>}, {pipeline_mode = #tpu.pipeline_mode<synchronous>, transform_indices = @transform_1, window_bounds = array<i64: 32, 128>}, {pipeline_mode = #tpu.pipeline_mode<synchronous>, transform_indices = @transform_2, window_bounds = array<i64: 1, 128>}, {pipeline_mode = #tpu.pipeline_mode<synchronous>, transform_indices = @transform_3, window_bounds = array<i64: 128, 128>}, {pipeline_mode = #tpu.pipeline_mode<synchronous>, transform_indices = @transform_4, window_bounds = array<i64: 1, 128>}, {pipeline_mode = #tpu.pipeline_mode<synchronous>, transform_indices = @transform_5, window_bounds = array<i64: 1, 128>}, {transform_indices = @transform_6, window_bounds = array<i64: 1>}, {transform_indices = @transform_7, window_bounds = array<i64: 1, 1, 16>}]} {
    %c0 = arith.constant 0 : index
    %c0_0 = arith.constant 0 : index
    %0 = vector.load %arg1[%c0, %c0_0] : memref<16x32xf32, #tpu.memory_space<vmem>>, vector<16x32xf32>
    %c0_1 = arith.constant 0 : index
    %c0_2 = arith.constant 0 : index
    %1 = vector.load %arg2[%c0_1, %c0_2] : memref<32x128xf32, #tpu.memory_space<vmem>>, vector<32x128xf32>
    %cst = arith.constant dense<0.000000e+00> : vector<16x128xf32>
    %2 = tpu.matmul %0, %1, %cst {dimension_numbers = #tpu.dot_dimension_numbers<[1], [0], [0], [1], [0, 0, 1, 1], [], []>} : vector<16x32xf32>, vector<32x128xf32>, vector<16x128xf32> -> vector<16x128xf32>
    %c0_3 = arith.constant 0 : index
    %c0_4 = arith.constant 0 : index
    %3 = vector.load %arg3[%c0_3, %c0_4] : memref<1x128xf32, #tpu.memory_space<vmem>>, vector<1x128xf32>
    %4 = vector.broadcast %3 : vector<1x128xf32> to vector<16x128xf32>
    %5 = arith.addf %2, %4 : vector<16x128xf32>
    %cst_5 = arith.constant 0.000000e+00 : f32
    %6 = vector.broadcast %cst_5 : f32 to vector<16x128xf32>
    %7 = arith.maximumf %5, %6 : vector<16x128xf32>
    %c0_6 = arith.constant 0 : index
    %c0_7 = arith.constant 0 : index
    %8 = vector.load %arg4[%c0_6, %c0_7] : memref<128x128xf32, #tpu.memory_space<vmem>>, vector<128x128xf32>
    %cst_8 = arith.constant dense<0.000000e+00> : vector<16x128xf32>
    %9 = tpu.matmul %7, %8, %cst_8 {dimension_numbers = #tpu.dot_dimension_numbers<[1], [0], [0], [1], [0, 0, 1, 1], [], []>} : vector<16x128xf32>, vector<128x128xf32>, vector<16x128xf32> -> vector<16x128xf32>
    %c0_9 = arith.constant 0 : index
    %c0_10 = arith.constant 0 : index
    %10 = vector.load %arg5[%c0_9, %c0_10] : memref<1x128xf32, #tpu.memory_space<vmem>>, vector<1x128xf32>
    %11 = vector.broadcast %10 : vector<1x128xf32> to vector<16x128xf32>
    %12 = arith.addf %9, %11 : vector<16x128xf32>
    %cst_11 = arith.constant 0.000000e+00 : f32
    %13 = vector.broadcast %cst_11 : f32 to vector<16x128xf32>
    %14 = arith.maximumf %12, %13 : vector<16x128xf32>
    %c0_12 = arith.constant 0 : index
    %c0_13 = arith.constant 0 : index
    %15 = vector.load %arg6[%c0_12, %c0_13] : memref<1x128xf32, #tpu.memory_space<vmem>>, vector<1x128xf32>
    %cst_14 = arith.constant dense<0.000000e+00> : vector<1x16xf32>
    %16 = tpu.matmul %15, %14, %cst_14 {dimension_numbers = #tpu.dot_dimension_numbers<[1], [1], [0], [0], [0, 0, 1, 0], [], []>} : vector<1x128xf32>, vector<16x128xf32>, vector<1x16xf32> -> vector<1x16xf32>
    %c0_15 = arith.constant 0 : index
    %17 = memref.load %arg7[%c0_15] : memref<1xf32, #tpu.memory_space<smem>>
    %18 = vector.broadcast %17 : f32 to vector<1x16xf32>
    %19 = arith.addf %16, %18 : vector<1x16xf32>
    %c0_16 = arith.constant 0 : index
    %c0_17 = arith.constant 0 : index
    %c0_18 = arith.constant 0 : index
    %20 = vector.load %arg8[%c0_16, %c0_17, %c0_18] : memref<1x1x16xf32, #tpu.memory_space<vmem>>, vector<1x1x16xf32>
    %21 = vector.shape_cast %20 : vector<1x1x16xf32> to vector<1x16xf32>
    %22 = vector.shape_cast %19 : vector<1x16xf32> to vector<1x1x16xf32>
    tpu.vector_store %arg8[%c0_16, %c0_17, %c0_18], %22 {strides = array<i32>} : memref<1x1x16xf32, #tpu.memory_space<vmem>>, vector<1x1x16xf32>,
    return
  }
  func.func @transform_0(%arg0: i32) -> (i32, i32) {
    %c0_i32 = arith.constant 0 : i32
    %c0_i32_0 = arith.constant 0 : i32
    return %arg0, %c0_i32 : i32, i32
  }
  func.func @transform_1(%arg0: i32) -> (i32, i32) {
    %c0_i32 = arith.constant 0 : i32
    %c0_i32_0 = arith.constant 0 : i32
    %c0_i32_1 = arith.constant 0 : i32
    return %c0_i32, %c0_i32_0 : i32, i32
  }
  func.func @transform_2(%arg0: i32) -> (i32, i32) {
    %c0_i32 = arith.constant 0 : i32
    %c0_i32_0 = arith.constant 0 : i32
    %c0_i32_1 = arith.constant 0 : i32
    return %c0_i32, %c0_i32_0 : i32, i32
  }
  func.func @transform_3(%arg0: i32) -> (i32, i32) {
    %c0_i32 = arith.constant 0 : i32
    %c0_i32_0 = arith.constant 0 : i32
    %c0_i32_1 = arith.constant 0 : i32
    return %c0_i32, %c0_i32_0 : i32, i32
  }
  func.func @transform_4(%arg0: i32) -> (i32, i32) {
    %c0_i32 = arith.constant 0 : i32
    %c0_i32_0 = arith.constant 0 : i32
    %c0_i32_1 = arith.constant 0 : i32
    return %c0_i32, %c0_i32_0 : i32, i32
  }
  func.func @transform_5(%arg0: i32) -> (i32, i32) {
    %c0_i32 = arith.constant 0 : i32
    %c0_i32_0 = arith.constant 0 : i32
    %c0_i32_1 = arith.constant 0 : i32
    return %c0_i32, %c0_i32_0 : i32, i32
  }
  func.func @transform_6(%arg0: i32) -> i32 {
    %c0_i32 = arith.constant 0 : i32
    %c0_i32_0 = arith.constant 0 : i32
    return %c0_i32 : i32
  }
  func.func @transform_7(%arg0: i32) -> (i32, i32, i32) {
    %c0_i32 = arith.constant 0 : i32
    %c0_i32_0 = arith.constant 0 : i32
    %c0_i32_1 = arith.constant 0 : i32
    return %arg0, %c0_i32, %c0_i32_0 : i32, i32, i32
  }
}

</mosaic_0001>

<bundles_post_ra>
// kernel: tpu_custom_call.1
= control target key start
LH: loop header
LB: loop body
LE: loop exit
PB: predicated region body
PF: predicated region fallthrough
CT: control target
= control target key end

     0   :  { %13 = vsyncpa [#allocation4], 0  ;;  %s405_s0 = inlined_call_operand.hbm [shape: f32[16,32], index: 0, kind: input, shape index: {}]   ;;  %s406_s1 = inlined_call_operand.hbm [shape: f32[32,128], index: 1, kind: input, shape index: {}]   ;;  %s407_s2 = inlined_call_operand.vmem [shape: f32[1,128], index: 2, kind: input, shape index: {}]   ;;  %s408_s3 = inlined_call_operand.hbm [shape: f32[128,128], index: 3, kind: input, shape index: {}]   ;;  %s409_s4 = inlined_call_operand.vmem [shape: f32[1,128], index: 4, kind: input, shape index: {}]   ;;  %s410_s5 = inlined_call_operand.vmem [shape: f32[1,128], index: 5, kind: input, shape index: {}]   ;;  %s411_s6 = inlined_call_operand.<no memory space> [shape: f32[1], index: 6, kind: input, shape index: {}]   ;;  %s412_s7 = inlined_call_operand.hbm [shape: f32[1,1,16], index: 7, kind: output, shape index: {}]  }
   0x1   :  { %14 = vsyncpa [#allocation7], 0 }
   0x2   :  { %15 = vsyncpa [#allocation5], 0  ;;  %s33_s26 = sshll.u32 %s406_s1, 4  ;;  %s333_s27 = smov [#allocation6]   ;;  %s34_s26 = int_to_ptr.hbm [resolvable:$true] %s33_s26 }
   0x3   :  { %s35_s28 = sshll.u32 %s333_s27, 4  ;;  %s20_s8 = sshll.u32 %s405_s0, 4  ;;  %s36_s28 = int_to_ptr.vmem [resolvable:$true] %s35_s28  ;;  %s21_s8 = int_to_ptr.hbm [resolvable:$true] %s20_s8 }
   0x4   :  { %s334_s9 = smov 128   ;;  %s335_s10 = smov 8  }
   0x5   :  { %41 = dma.hbm_to_vmem [thread:$0]  %s34_s26, 512, %s36_s28, [#allocation7], %s334_s9, %s334_s9, %s335_s10  }
   0x6   :  { %s336_s11 = smov [#allocation3]   ;;  %s48_s15 = sshll.u32 %s408_s3, 4  ;;  %s49_s15 = int_to_ptr.hbm [resolvable:$true] %s48_s15 }
   0x7   :  { %s22_s12 = sshll.u32 %s336_s11, 4  ;;  %s337_s1 = smov [#allocation8]   ;;  %s23_s12 = int_to_ptr.vmem [resolvable:$true] %s22_s12 }
   0x8   :  { %28 = dma.hbm_to_vmem [thread:$0]  %s21_s8, 256, %s23_s12, [#allocation4], %s334_s9, %s334_s9, %s335_s10  }
   0x9   :  { %s50_s16 = sshll.u32 %s337_s1, 4  ;;  %s51_s16 = int_to_ptr.vmem [resolvable:$true] %s50_s16 }
   0xa   :  { %56 = dma.hbm_to_vmem [thread:$0]  %s49_s15, 2048, %s51_s16, [#allocation7], %s334_s9, %s334_s9, %s335_s10  }
   0xb   :  { %327 = dma.done.wait [#allocation4], 256  }
   0xc   :  { %328 = vsyncadd [#allocation4], 4294967040 }
   0xd   :  { %329 = dma.done.wait [#allocation7], 2560  }
   0xe   :  { %330 = vsyncadd [#allocation7], 4294964736  ;;  %v80_v0 = vld [vmem:[#allocation6 + $0x18] sm:$0xff]  ;;  %v79_v1 = vld [vmem:[#allocation6 + $0x10] sm:$0xff]  ;;  %vm85_vm0 = vcmask 261120   ;;  %v164_v37 = vstv %s411_s6  ;;  %s338_s22 = smov [#allocation9]  }
   0xf   :  { %104 = vmatpush.msra.mxu0 %v80_v0  ;;  %v78_v2 = vld [vmem:[#allocation6 + $0x8] sm:$0xff]  ;;  %v132_v3 = vld [vmem:[#allocation8 + $0x78] sm:$0xff]  ;;  %v131_v4 = vld [vmem:[#allocation8 + $0x70] sm:$0xff]  ;;  %s192_s23 = sshll.u32 %s338_s22, 4  ;;  %s194_s25 = sshll.u32 %s412_s7, 4  ;;  %vm185_vm1 = vcmask 122880   ;;  %s193_s23 = int_to_ptr.vmem [resolvable:$true] %s192_s23  ;;  %s195_s25 = int_to_ptr.hbm [resolvable:$true] %s194_s25 }
  0x10   :  { %137 = vmatpush.msra.mxu1 %v132_v3  ;;  %v77_v5 = vld [vmem:[#allocation6] sm:$0xff]  ;;  %v130_v6 = vld [vmem:[#allocation8 + $0x68] sm:$0xff]  ;;  %207 = vmatpush.msra.mxu3 %v132_v3  ;;  %v75_v7 = vld [vmem:[#allocation3] sm:$0xff] }
  0x11   :  { %105 = vmatpush.msra.mxu0 %v79_v1  ;;  %v129_v8 = vld [vmem:[#allocation8 + $0x60] sm:$0xff]  ;;  %v128_v9 = vld [vmem:[#allocation8 + $0x58] sm:$0xff]  ;;  %v127_v10 = vld [vmem:[#allocation8 + $0x50] sm:$0xff] }
  0x12   :  { %138 = vmatpush.msra.mxu1 %v131_v4  ;;  %208 = vmatpush.msra.mxu3 %v131_v4  ;;  %v126_v11 = vld [vmem:[#allocation8 + $0x48] sm:$0xff]  ;;  %v76_v12 = vld [vmem:[#allocation3 + $0x8] sm:$0xff]  ;;  %v125_v13 = vld [vmem:[#allocation8 + $0x40] sm:$0xff] }
  0x13   :  { %106 = vmatpush.msra.mxu0 %v78_v2  ;;  %v124_v14 = vld [vmem:[#allocation8 + $0x38] sm:$0xff]  ;;  %v123_v15 = vld [vmem:[#allocation8 + $0x30] sm:$0xff]  ;;  %v122_v16 = vld [vmem:[#allocation8 + $0x28] sm:$0xff] }
  0x14   :  { %139 = vmatpush.msra.mxu1 %v130_v6  ;;  %209 = vmatpush.msra.mxu3 %v130_v6  ;;  %v121_v17 = vld [vmem:[#allocation8 + $0x20] sm:$0xff]  ;;  %v120_v18 = vld [vmem:[#allocation8 + $0x18] sm:$0xff]  ;;  %v119_v19 = vld [vmem:[#allocation8 + $0x10] sm:$0xff] }
  0x15   :  { %107 = vmatpush.msra.mxu0 %v77_v5  ;;  %v118_v20 = vld [vmem:[#allocation8 + $0x8] sm:$0xff]  ;;  %v117_v21 = vld [vmem:[#allocation8] sm:$0xff]  ;;  %v229_v22 = vld [vmem:[%s407_s2] ss:$0 sm:$0xff] }
  0x16   :  { %205 = vmatmul.msk.f32.vlgmr.msra.gmra.mxu0 %vm85_vm0, %v75_v7  ;;  %140 = vmatpush.msra.mxu1 %v129_v8  ;;  %v230_v29 = vld [vmem:[%s409_s4] ss:$0 sm:$0xff] }
  0x17   :  { %210 = vmatpush.msra.mxu3 %v129_v8  ;;  %v162_v36 = vld [vmem:[%s410_s5] sm:$0x1] }
  0x18   :  { %141 = vmatpush.msra.mxu1 %v128_v9 }
  0x19   :  { %211 = vmatpush.msra.mxu3 %v128_v9 }
  0x1a   :  { %142 = vmatpush.msra.mxu1 %v127_v10 }
  0x1b   :  { %212 = vmatpush.msra.mxu3 %v127_v10 }
  0x1c   :  { %143 = vmatpush.msra.mxu1 %v126_v11 }
  0x1d   :  { %213 = vmatpush.msra.mxu3 %v126_v11 }
  0x1e   :  { %206 = vmatmul.msk.f32.gmra.mxu0 %vm85_vm0, %v76_v12  ;;  %144 = vmatpush.msra.mxu1 %v125_v13 }
  0x1f   :  { %214 = vmatpush.msra.mxu3 %v125_v13 }
  0x20   :  { %145 = vmatpush.msra.mxu1 %v124_v14 }
  0x21   :  { %215 = vmatpush.msra.mxu3 %v124_v14 }
  0x22   :  { %146 = vmatpush.msra.mxu1 %v123_v15 }
  0x23   :  { %216 = vmatpush.msra.mxu3 %v123_v15 }
  0x24   :  { %147 = vmatpush.msra.mxu1 %v122_v16 }
  0x25   :  { %217 = vmatpush.msra.mxu3 %v122_v16 }
  0x26   :  { %148 = vmatpush.msra.mxu1 %v121_v17 }
  0x27   :  { %218 = vmatpush.msra.mxu3 %v121_v17 }
  0x28   :  { %149 = vmatpush.msra.mxu1 %v120_v18 }
  0x29   :  { %219 = vmatpush.msra.mxu3 %v120_v18 }
  0x2a   :  { %150 = vmatpush.msra.mxu1 %v119_v19 }
  0x2b   :  { %220 = vmatpush.msra.mxu3 %v119_v19 }
  0x2c   :  { %151 = vmatpush.msra.mxu1 %v118_v20 }
  0x2d   :  { %221 = vmatpush.msra.mxu3 %v118_v20 }
  0x2e   :  { %152 = vmatpush.msra.mxu1 %v117_v21 }
  0x2f   :  { %222 = vmatpush.msra.mxu3 %v117_v21 }
  0x93   :  { %v109_v23 = vpop.f32.mrf.mxu0 }
  0x94   :  { %v110_v24 = vadd.f32 %v229_v22, %v109_v23 }
  0x96   :  { %v115_v25 = vmax.f32 %v110_v24, 0.0 }
  0x98   :  { %153 = vmatmul.f32.vlgmr.msra.gmra.mxu1 %v115_v25 }
  0x9b   :  { %v112_v26 = vpop.f32.mrf.mxu0 }
  0x9c   :  { %v113_v27 = vadd.f32 %v229_v22, %v112_v26 }
  0x9e   :  { %v116_v28 = vmax.f32 %v113_v27, 0.0 }
  0xa0   :  { %156 = vmatmul.f32.vlgmr.msra.gmra.mxu3 %v116_v28 }
 0x115   :  { %v154_v30 = vpop.f32.mrf.mxu1 }
 0x116   :  { %v155_v33 = vadd.f32 %v230_v29, %v154_v30 }
 0x118   :  { %v160_v35 = vmax.f32 %v155_v33, 0.0 }
 0x123   :  { %v157_v31 = vpop.f32.mrf.mxu3 }
 0x124   :  { %v158_v32 = vadd.f32 %v230_v29, %v157_v31 }
 0x126   :  { %v161_v34 = vmax.f32 %v158_v32, 0.0 }
 0x128   :  { %179 = vmatpush.xpose.msra.mxu2 %v161_v34 }
 0x12c   :  { %180 = vmatpush.xpose.msra.mxu2 %v160_v35 }
 0x12f   :  { %181 = vmatmul.f32.vlgmr.msra.gmra.mxu2 %v162_v36 }
 0x1b2   :  { %v182_v38 = vpop.f32.mrf.mxu2 }
 0x1b3   :  { %v183_v39 = vadd.f32 %v182_v38, %v164_v37 }
 0x1b5   :  { %186 = vst.msk [vmem:[#allocation9] sm:$0x1] %vm185_vm1, %v183_v39 }
 0x1b6   :  { %197 = dma.vmem_to_hbm [thread:$0]  %s193_s23, 16, %s195_s25, [#allocation5]  }
 0x1b7   :  { %331 = dma.done.wait [#allocation5], 16  }
 0x1b8   :  { %332 = vsyncadd [#allocation5], 4294967280 }
 0x1b9   :  { %202 = vsyncpa [#allocation4], 1 }
 0x1ba   :  { %203 = vsyncpa [#allocation7], 1 }
 0x1bb   :  { %204 = vsyncpa [#allocation5], 1 }

</bundles_post_ra>
